<compile_context>
chip_gen: v5e
topology: v5e:2x2
jax: 0.10.0
libtpu: 0.0.40
codegen_flags: <defaults>
</compile_context>

<pallas_src>
import functools

import jax
import jax.numpy as jnp
from jax.experimental import pallas as pl
from jax.experimental.pallas import tpu as pltpu

LANE = 128
BF16_SUBLANE = 16  # bf16 packs 16 rows per vreg sublane group


def _round_up(n, m):
    return ((n + m - 1) // m) * m


def _pad_dim(d):
    # 128-lane alignment for small dims; 256-alignment for real-sized dims so
    # the 2x256x256 MXU on v6e/v7x runs full width (no extra cost when d<256).
    return _round_up(d, 256) if d >= 256 else _round_up(d, LANE)


def _choose_tb(batch_16, tb_max):
    """Pick a batch tile: multiple of 16, large, and >=2 grid steps when there
    is enough work so both v7x TensorCores get grid iterations."""
    tb = min(tb_max, batch_16)
    if tb == batch_16 and batch_16 >= 64:
        tb = _round_up((batch_16 + 1) // 2, BF16_SUBLANE)
    return tb


def mlp_kernel(*refs, n_layers, out_valid):
    # refs = (x_ref, w0, b0, w1, b1, ..., o_ref)
    # x_ref: (TB, P0) bf16; w_i: (Pin_i, Pout_i) bf16; b_i: (1, Pout_i) f32.
    x_ref, o_ref = refs[0], refs[-1]
    h = x_ref[...]
    logits = None
    for i in range(n_layers):
        w_ref = refs[1 + 2 * i]
        b_ref = refs[2 + 2 * i]
        acc = jnp.dot(h, w_ref[...],
                      preferred_element_type=jnp.float32) + b_ref[...]
        if i < n_layers - 1:
            # Dropout(0.5) is identity at inference. Padded columns stay exactly
            # zero (zero weight cols + zero bias), so padding chains correctly.
            h = acc.astype(jnp.bfloat16)
        else:
            logits = acc

    # Mask padded output columns so they do not perturb the log_softmax.
    if out_valid < logits.shape[-1]:
        col = jax.lax.broadcasted_iota(jnp.int32, logits.shape, dimension=1)
        logits = jnp.where(col < out_valid, logits, -jnp.inf)

    # Numerically-stable log_softmax along the last dim.
    m = jnp.max(logits, axis=-1, keepdims=True)
    lse = m + jnp.log(jnp.sum(jnp.exp(logits - m), axis=-1, keepdims=True))
    o_ref[...] = (logits - lse).astype(o_ref.dtype)


def pack_params(params):
    """One-time layout plumbing: per-layer zero-padded bf16 weights / f32 biases.

    params: ((w1, b1), ..., (wL, bL)) with w as [in, out]. Call once at init
    and reuse the packed arrays on every forward call.
    """
    packed = []
    for w, b in params:
        pi, po = _pad_dim(w.shape[0]), _pad_dim(w.shape[1])
        wp = jnp.pad(w.astype(jnp.bfloat16),
                     ((0, pi - w.shape[0]), (0, po - w.shape[1])))
        bp = jnp.pad(b.reshape(1, -1).astype(jnp.float32),
                     ((0, 0), (0, po - b.shape[-1])))
        packed.append((wp, bp))
    return tuple(packed)


def mlp_forward(x, packed, out_feats, *, tb=512):
    """x: [batch, in_feats] f32; packed: output of pack_params; out_feats: int."""
    L = len(packed)
    p_in = packed[0][0].shape[0]
    p_out = packed[-1][0].shape[1]
    batch, in_feats = x.shape

    batch_16 = _round_up(batch, BF16_SUBLANE)
    tb_eff = _choose_tb(batch_16, tb)
    batch_p = _round_up(batch_16, tb_eff)

    xb = x.astype(jnp.bfloat16)
    if batch_p != batch or p_in != in_feats:
        xb = jnp.pad(xb, ((0, batch_p - batch), (0, p_in - in_feats)))

    flat_params = []
    in_specs = [pl.BlockSpec((tb_eff, p_in), lambda i: (i, 0))]
    for wp, bp in packed:
        flat_params += [wp, bp]
        # Constant block index -> VMEM-resident; single buffer (no point in
        # double-buffering parameters that never change across grid steps).
        in_specs.append(pl.BlockSpec(wp.shape, lambda i: (0, 0),
                                     pipeline_mode=pl.Buffered(1)))
        in_specs.append(pl.BlockSpec(bp.shape, lambda i: (0, 0),
                                     pipeline_mode=pl.Buffered(1)))

    kernel = functools.partial(mlp_kernel, n_layers=L, out_valid=out_feats)

    # VMEM budget: weights single-buffered + x/out double-buffered + activation
    # headroom; 2x safety margin, 16 MiB floor, 64 MiB cap (fits v7x VMEM).
    w_bytes = sum(w.size * 2 + b.size * 4 for w, b in packed)
    io_bytes = 2 * tb_eff * p_in * 2 + 2 * tb_eff * p_out * 4
    act_bytes = 2 * tb_eff * max(w.shape[1] for w, _ in packed) * 4
    vmem_limit = int(min(64 << 20,
                         max(16 << 20, 2 * (w_bytes + io_bytes + act_bytes))))

    y = pl.pallas_call(
        kernel,
        out_shape=jax.ShapeDtypeStruct((batch_p, p_out), jnp.float32),
        grid=(batch_p // tb_eff,),
        in_specs=in_specs,
        out_specs=pl.BlockSpec((tb_eff, p_out), lambda i: (i, 0)),
        compiler_params=pltpu.CompilerParams(
            dimension_semantics=("parallel",),
            vmem_limit_bytes=vmem_limit),
    )(xb, *flat_params)

    return y[:batch, :out_feats]


def init_params(key, in_feats, hidden_layers, out):
    """Deterministic init mimicking nn.Linear default (uniform +-1/sqrt(fan_in))."""
    dims = [in_feats] + list(hidden_layers) + [out]
    params = []
    for i in range(len(dims) - 1):
        fan_in, fan_out = dims[i], dims[i + 1]
        key, kw, kb = jax.random.split(key, 3)
        bound = 1.0 / (fan_in ** 0.5)
        w = jax.random.uniform(kw, (fan_in, fan_out), jnp.float32,
                               minval=-bound, maxval=bound)
        b = jax.random.uniform(kb, (fan_out,), jnp.float32,
                               minval=-bound, maxval=bound)
        params.append((w, b))
    return tuple(params)


def mlp_reference(x, params):
    """Pure-JAX reference with the same bf16 operand / f32 accumulate recipe."""
    h = x.astype(jnp.bfloat16)
    n = len(params)
    acc = None
    for i, (w, b) in enumerate(params):
        acc = jnp.dot(h, w.astype(jnp.bfloat16),
                      preferred_element_type=jnp.float32) + b[None, :]
        h = acc.astype(jnp.bfloat16) if i < n - 1 else acc
    return jax.nn.log_softmax(acc, axis=-1)


if __name__ == "__main__":
    key = jax.random.PRNGKey(0)

    batch = 8
    in_feats = 32
    hidden_layers = [64, 32]
    out = 2

    key, kx = jax.random.split(key)
    x = jax.random.normal(kx, (batch, in_feats), jnp.float32)
    params = init_params(key, in_feats, hidden_layers, out)

    packed = pack_params(params)  # one-time, off the hot path
    y = mlp_forward(x, packed, out)
    jax.block_until_ready(y)

    assert y.shape == (batch, out)

    # log_softmax rows must exponentiate-sum to 1
    row_sums = jnp.sum(jnp.exp(y), axis=-1)
    assert bool(jnp.all(jnp.abs(row_sums - 1.0) < 1e-4))

    # match the pure-JAX reference (bf16 operands, f32 accumulation)
    y_ref = mlp_reference(x, params)
    assert bool(jnp.max(jnp.abs(y - y_ref)) < 2e-2)

    print("KERNEL_OK")
</pallas_src>

<mosaic_0001>
module attributes {stable_mosaic.version = 11 : i64} {
  func.func @mlp_kernel(%arg0: i32, %arg1: memref<16x128xbf16, #tpu.memory_space<vmem>>, %arg2: memref<128x128xbf16, #tpu.memory_space<vmem>>, %arg3: memref<1x128xf32, #tpu.memory_space<vmem>>, %arg4: memref<128x128xbf16, #tpu.memory_space<vmem>>, %arg5: memref<1x128xf32, #tpu.memory_space<vmem>>, %arg6: memref<128x128xbf16, #tpu.memory_space<vmem>>, %arg7: memref<1x128xf32, #tpu.memory_space<vmem>>, %arg8: memref<16x128xf32, #tpu.memory_space<vmem>>) attributes {dimension_semantics = [#tpu.dimension_semantics<parallel>], iteration_bounds = array<i64: 1>, scalar_prefetch = 0 : i64, scratch_operands = 0 : i64, tpu.core_type = #tpu.core_type<tc>, window_params = [{transform_indices = @transform_0, window_bounds = array<i64: 16, 128>}, {pipeline_mode = #tpu.pipeline_mode<synchronous>, transform_indices = @transform_1, window_bounds = array<i64: 128, 128>}, {pipeline_mode = #tpu.pipeline_mode<synchronous>, transform_indices = @transform_2, window_bounds = array<i64: 1, 128>}, {pipeline_mode = #tpu.pipeline_mode<synchronous>, transform_indices = @transform_3, window_bounds = array<i64: 128, 128>}, {pipeline_mode = #tpu.pipeline_mode<synchronous>, transform_indices = @transform_4, window_bounds = array<i64: 1, 128>}, {pipeline_mode = #tpu.pipeline_mode<synchronous>, transform_indices = @transform_5, window_bounds = array<i64: 128, 128>}, {pipeline_mode = #tpu.pipeline_mode<synchronous>, transform_indices = @transform_6, window_bounds = array<i64: 1, 128>}, {transform_indices = @transform_7, window_bounds = array<i64: 16, 128>}]} {
    %c0 = arith.constant 0 : index
    %c0_0 = arith.constant 0 : index
    %0 = vector.load %arg1[%c0, %c0_0] : memref<16x128xbf16, #tpu.memory_space<vmem>>, vector<16x128xbf16>
    %c0_1 = arith.constant 0 : index
    %c0_2 = arith.constant 0 : index
    %1 = vector.load %arg2[%c0_1, %c0_2] : memref<128x128xbf16, #tpu.memory_space<vmem>>, vector<128x128xbf16>
    %cst = arith.constant dense<0.000000e+00> : vector<16x128xf32>
    %2 = tpu.matmul %0, %1, %cst {dimension_numbers = #tpu.dot_dimension_numbers<[1], [0], [0], [1], [0, 0, 1, 1], [], []>} : vector<16x128xbf16>, vector<128x128xbf16>, vector<16x128xf32> -> vector<16x128xf32>
    %c0_3 = arith.constant 0 : index
    %c0_4 = arith.constant 0 : index
    %3 = vector.load %arg3[%c0_3, %c0_4] : memref<1x128xf32, #tpu.memory_space<vmem>>, vector<1x128xf32>
    %4 = vector.broadcast %3 : vector<1x128xf32> to vector<16x128xf32>
    %5 = arith.addf %2, %4 : vector<16x128xf32>
    %6 = arith.truncf %5 : vector<16x128xf32> to vector<16x128xbf16>
    %c0_5 = arith.constant 0 : index
    %c0_6 = arith.constant 0 : index
    %7 = vector.load %arg4[%c0_5, %c0_6] : memref<128x128xbf16, #tpu.memory_space<vmem>>, vector<128x128xbf16>
    %cst_7 = arith.constant dense<0.000000e+00> : vector<16x128xf32>
    %8 = tpu.matmul %6, %7, %cst_7 {dimension_numbers = #tpu.dot_dimension_numbers<[1], [0], [0], [1], [0, 0, 1, 1], [], []>} : vector<16x128xbf16>, vector<128x128xbf16>, vector<16x128xf32> -> vector<16x128xf32>
    %c0_8 = arith.constant 0 : index
    %c0_9 = arith.constant 0 : index
    %9 = vector.load %arg5[%c0_8, %c0_9] : memref<1x128xf32, #tpu.memory_space<vmem>>, vector<1x128xf32>
    %10 = vector.broadcast %9 : vector<1x128xf32> to vector<16x128xf32>
    %11 = arith.addf %8, %10 : vector<16x128xf32>
    %12 = arith.truncf %11 : vector<16x128xf32> to vector<16x128xbf16>
    %c0_10 = arith.constant 0 : index
    %c0_11 = arith.constant 0 : index
    %13 = vector.load %arg6[%c0_10, %c0_11] : memref<128x128xbf16, #tpu.memory_space<vmem>>, vector<128x128xbf16>
    %cst_12 = arith.constant dense<0.000000e+00> : vector<16x128xf32>
    %14 = tpu.matmul %12, %13, %cst_12 {dimension_numbers = #tpu.dot_dimension_numbers<[1], [0], [0], [1], [0, 0, 1, 1], [], []>} : vector<16x128xbf16>, vector<128x128xbf16>, vector<16x128xf32> -> vector<16x128xf32>
    %c0_13 = arith.constant 0 : index
    %c0_14 = arith.constant 0 : index
    %15 = vector.load %arg7[%c0_13, %c0_14] : memref<1x128xf32, #tpu.memory_space<vmem>>, vector<1x128xf32>
    %16 = vector.broadcast %15 : vector<1x128xf32> to vector<16x128xf32>
    %17 = arith.addf %14, %16 : vector<16x128xf32>
    %18 = tpu.iota {dimensions = array<i32: 1>} : vector<16x128xi32>
    %c2_i32 = arith.constant 2 : i32
    %19 = vector.broadcast %c2_i32 : i32 to vector<16x128xi32>
    %20 = arith.cmpi slt, %18, %19 : vector<16x128xi32>
    %cst_15 = arith.constant 0xFF800000 : f32
    %21 = vector.broadcast %cst_15 : f32 to vector<16x128xf32>
    %22 = arith.select %20, %17, %21 : vector<16x128xi1>, vector<16x128xf32>
    %cst_16 = arith.constant dense<0xFF800000> : vector<16xf32>
    %23 = vector.multi_reduction <maximumf>, %22, %cst_16 [1] : vector<16x128xf32> to vector<16xf32>
    %24 = vector.shape_cast %23 : vector<16xf32> to vector<16x1xf32>
    %25 = vector.broadcast %24 : vector<16x1xf32> to vector<16x128xf32>
    %26 = arith.subf %22, %25 : vector<16x128xf32>
    %27 = math.exp %26 : vector<16x128xf32>
    %cst_17 = arith.constant dense<0.000000e+00> : vector<16xf32>
    %28 = vector.multi_reduction <add>, %27, %cst_17 [1] : vector<16x128xf32> to vector<16xf32>
    %29 = vector.shape_cast %28 : vector<16xf32> to vector<16x1xf32>
    %30 = math.log %29 : vector<16x1xf32>
    %31 = arith.addf %24, %30 : vector<16x1xf32>
    %32 = vector.broadcast %31 : vector<16x1xf32> to vector<16x128xf32>
    %33 = arith.subf %22, %32 : vector<16x128xf32>
    %c0_18 = arith.constant 0 : index
    %c0_19 = arith.constant 0 : index
    %34 = vector.load %arg8[%c0_18, %c0_19] : memref<16x128xf32, #tpu.memory_space<vmem>>, vector<16x128xf32>
    tpu.vector_store %arg8[%c0_18, %c0_19], %33 {strides = array<i32>} : memref<16x128xf32, #tpu.memory_space<vmem>>, vector<16x128xf32>,
    return
  }
  func.func @transform_0(%arg0: i32) -> (i32, i32) {
    %c0_i32 = arith.constant 0 : i32
    %c0_i32_0 = arith.constant 0 : i32
    return %arg0, %c0_i32 : i32, i32
  }
  func.func @transform_1(%arg0: i32) -> (i32, i32) {
    %c0_i32 = arith.constant 0 : i32
    %c0_i32_0 = arith.constant 0 : i32
    %c0_i32_1 = arith.constant 0 : i32
    return %c0_i32, %c0_i32_0 : i32, i32
  }
  func.func @transform_2(%arg0: i32) -> (i32, i32) {
    %c0_i32 = arith.constant 0 : i32
    %c0_i32_0 = arith.constant 0 : i32
    %c0_i32_1 = arith.constant 0 : i32
    return %c0_i32, %c0_i32_0 : i32, i32
  }
  func.func @transform_3(%arg0: i32) -> (i32, i32) {
    %c0_i32 = arith.constant 0 : i32
    %c0_i32_0 = arith.constant 0 : i32
    %c0_i32_1 = arith.constant 0 : i32
    return %c0_i32, %c0_i32_0 : i32, i32
  }
  func.func @transform_4(%arg0: i32) -> (i32, i32) {
    %c0_i32 = arith.constant 0 : i32
    %c0_i32_0 = arith.constant 0 : i32
    %c0_i32_1 = arith.constant 0 : i32
    return %c0_i32, %c0_i32_0 : i32, i32
  }
  func.func @transform_5(%arg0: i32) -> (i32, i32) {
    %c0_i32 = arith.constant 0 : i32
    %c0_i32_0 = arith.constant 0 : i32
    %c0_i32_1 = arith.constant 0 : i32
    return %c0_i32, %c0_i32_0 : i32, i32
  }
  func.func @transform_6(%arg0: i32) -> (i32, i32) {
    %c0_i32 = arith.constant 0 : i32
    %c0_i32_0 = arith.constant 0 : i32
    %c0_i32_1 = arith.constant 0 : i32
    return %c0_i32, %c0_i32_0 : i32, i32
  }
  func.func @transform_7(%arg0: i32) -> (i32, i32) {
    %c0_i32 = arith.constant 0 : i32
    %c0_i32_0 = arith.constant 0 : i32
    return %arg0, %c0_i32 : i32, i32
  }
}

</mosaic_0001>

<bundles_post_ra>
// kernel: tpu_custom_call.1
= control target key start
LH: loop header
LB: loop body
LE: loop exit
PB: predicated region body
PF: predicated region fallthrough
CT: control target
= control target key end

     0   :  { %12 = vsyncpa [#allocation3], 0  ;;  %s742_s0 = inlined_call_operand.hbm [shape: bf16[16,128], index: 0, kind: input, shape index: {}]   ;;  %s743_s1 = inlined_call_operand.hbm [shape: bf16[128,128], index: 1, kind: input, shape index: {}]   ;;  %s744_s2 = inlined_call_operand.vmem [shape: f32[1,128], index: 2, kind: input, shape index: {}]   ;;  %s745_s3 = inlined_call_operand.hbm [shape: bf16[128,128], index: 3, kind: input, shape index: {}]   ;;  %s746_s4 = inlined_call_operand.vmem [shape: f32[1,128], index: 4, kind: input, shape index: {}]   ;;  %s747_s5 = inlined_call_operand.hbm [shape: bf16[128,128], index: 5, kind: input, shape index: {}]   ;;  %s748_s6 = inlined_call_operand.vmem [shape: f32[1,128], index: 6, kind: input, shape index: {}]   ;;  %s749_s7 = inlined_call_operand.hbm [shape: f32[16,128], index: 7, kind: output, shape index: {}]  }
   0x1   :  { %13 = vsyncpa [#allocation6], 0 }
   0x2   :  { %14 = vsyncpa [#allocation9], 0 }
   0x3   :  { %15 = vsyncpa [#allocation4], 0  ;;  %s33_s26 = sshll.u32 %s743_s1, 4  ;;  %s669_s27 = smov [#allocation5]   ;;  %s34_s26 = int_to_ptr.hbm [resolvable:$true] %s33_s26 }
   0x4   :  { %s35_s28 = sshll.u32 %s669_s27, 4  ;;  %s20_s8 = sshll.u32 %s742_s0, 4  ;;  %s36_s28 = int_to_ptr.vmem [resolvable:$true] %s35_s28  ;;  %s21_s8 = int_to_ptr.hbm [resolvable:$true] %s20_s8 }
   0x5   :  { %s670_s9 = smov 64   ;;  %s671_s10 = smov 4  }
   0x6   :  { %41 = dma.hbm_to_vmem [thread:$0]  %s34_s26, 1024, %s36_s28, [#allocation6], %s670_s9, %s670_s9, %s671_s10  }
   0x7   :  { %s672_s11 = smov [#allocation2]   ;;  %s48_s15 = sshll.u32 %s745_s3, 4  ;;  %s49_s15 = int_to_ptr.hbm [resolvable:$true] %s48_s15 }
   0x8   :  { %s22_s12 = sshll.u32 %s672_s11, 4  ;;  %s63_s17 = sshll.u32 %s747_s5, 4  ;;  %s23_s12 = int_to_ptr.vmem [resolvable:$true] %s22_s12  ;;  %s64_s17 = int_to_ptr.hbm [resolvable:$true] %s63_s17 }
   0x9   :  { %28 = dma.hbm_to_vmem [thread:$0]  %s21_s8, 128, %s23_s12, [#allocation3], %s670_s9, %s670_s9, %s671_s10  }
   0xa   :  { %s673_s18 = smov [#allocation7]   ;;  %s674_s0 = smov [#allocation8]  }
   0xb   :  { %s50_s19 = sshll.u32 %s673_s18, 4  ;;  %s65_s20 = sshll.u32 %s674_s0, 4  ;;  %s51_s19 = int_to_ptr.vmem [resolvable:$true] %s50_s19  ;;  %s66_s20 = int_to_ptr.vmem [resolvable:$true] %s65_s20 }
   0xc   :  { %56 = dma.hbm_to_vmem [thread:$0]  %s49_s15, 1024, %s51_s19, [#allocation6], %s670_s9, %s670_s9, %s671_s10  }
   0xd   :  { %71 = dma.hbm_to_vmem [thread:$0]  %s64_s17, 1024, %s66_s20, [#allocation9], %s670_s9, %s670_s9, %s671_s10  }
   0xe   :  { %661 = dma.done.wait [#allocation3], 128  }
   0xf   :  { %662 = vsyncadd [#allocation3], 4294967168 }
  0x10   :  { %663 = dma.done.wait [#allocation6], 2048  }
  0x11   :  { %664 = vsyncadd [#allocation6], 4294965248 }
  0x12   :  { %665 = dma.done.wait [#allocation9], 1024  }
  0x13   :  { %666 = vsyncadd [#allocation9], 4294966272  ;;  %v504_v0 = vld [vmem:[#allocation5 + $0x38] sm:$0xff]  ;;  %v503_v1 = vld [vmem:[#allocation5 + $0x30] sm:$0xff]  ;;  %v346_v37 = vlaneseq  ;;  %s381_s26 = sshll.u32 %s749_s7, 4  ;;  %s676_s27 = smov 128   ;;  %s382_s26 = int_to_ptr.hbm [resolvable:$true] %s381_s26 }
  0x14   :  { %166 = vmatpush.bf16.msra.mxu0 %v504_v0  ;;  %v512_v2 = vld [vmem:[#allocation7 + $0x38] sm:$0xff]  ;;  %v511_v3 = vld [vmem:[#allocation7 + $0x30] sm:$0xff]  ;;  %v502_v4 = vld [vmem:[#allocation5 + $0x28] sm:$0xff]  ;;  %s677_s28 = smov 8  }
  0x15   :  { %249 = vmatpush.bf16.msra.mxu1 %v512_v2  ;;  %v510_v5 = vld [vmem:[#allocation7 + $0x28] sm:$0xff]  ;;  %v501_v6 = vld [vmem:[#allocation5 + $0x20] sm:$0xff]  ;;  %v500_v8 = vld [vmem:[#allocation5 + $0x18] sm:$0xff]  ;;  %v347_v38 = vand.u32 127, %v346_v37 }
  0x16   :  { %v509_v7 = vld [vmem:[#allocation7 + $0x20] sm:$0xff]  ;;  %v508_v9 = vld [vmem:[#allocation7 + $0x18] sm:$0xff]  ;;  %v499_v10 = vld [vmem:[#allocation5 + $0x10] sm:$0xff] }
  0x17   :  { %v498_v11 = vld [vmem:[#allocation5 + $0x8] sm:$0xff]  ;;  %v497_v12 = vld [vmem:[#allocation5] sm:$0xff]  ;;  %v496_v13 = vld [vmem:[#allocation2] sm:$0xff]  ;;  %vm348_vm0 = vcmp.lt.s32.totalorder %v347_v38, 2 }
  0x18   :  { %167 = vmatpush.bf16.msra.mxu0 %v503_v1  ;;  %v507_v14 = vld [vmem:[#allocation7 + $0x10] sm:$0xff]  ;;  %v506_v15 = vld [vmem:[#allocation7 + $0x8] sm:$0xff]  ;;  %v505_v16 = vld [vmem:[#allocation7] sm:$0xff] }
  0x19   :  { %250 = vmatpush.bf16.msra.mxu1 %v511_v3  ;;  %v520_v17 = vld [vmem:[#allocation8 + $0x38] sm:$0xff]  ;;  %v519_v18 = vld [vmem:[#allocation8 + $0x30] sm:$0xff]  ;;  %v518_v19 = vld [vmem:[#allocation8 + $0x28] sm:$0xff] }
  0x1a   :  { %332 = vmatpush.bf16.msra.mxu2 %v520_v17  ;;  %v517_v20 = vld [vmem:[#allocation8 + $0x20] sm:$0xff]  ;;  %v516_v21 = vld [vmem:[#allocation8 + $0x18] sm:$0xff]  ;;  %v515_v28 = vld [vmem:[#allocation8 + $0x10] sm:$0xff] }
  0x1b   :  { %v530_v23 = vld [vmem:[%s744_s2] ss:$0 sm:$0xff]  ;;  %v514_v29 = vld [vmem:[#allocation8 + $0x8] sm:$0xff]  ;;  %v513_v30 = vld [vmem:[#allocation8] sm:$0xff] }
  0x1c   :  { %168 = vmatpush.bf16.msra.mxu0 %v502_v4  ;;  %v531_v32 = vld [vmem:[%s746_s4] ss:$0 sm:$0xff]  ;;  %s675_s4 = smov [#allocation10]  }
  0x1d   :  { %251 = vmatpush.bf16.msra.mxu1 %v510_v5  ;;  %v532_v39 = vld [vmem:[%s748_s6] ss:$0 sm:$0xff]  ;;  %s379_s6 = sshll.u32 %s675_s4, 4  ;;  %s380_s6 = int_to_ptr.vmem [resolvable:$true] %s379_s6 }
  0x1e   :  { %333 = vmatpush.bf16.msra.mxu2 %v519_v18 }
  0x20   :  { %169 = vmatpush.bf16.msra.mxu0 %v501_v6 }
  0x21   :  { %252 = vmatpush.bf16.msra.mxu1 %v509_v7 }
  0x22   :  { %334 = vmatpush.bf16.msra.mxu2 %v518_v19 }
  0x24   :  { %170 = vmatpush.bf16.msra.mxu0 %v500_v8 }
  0x25   :  { %253 = vmatpush.bf16.msra.mxu1 %v508_v9 }
  0x26   :  { %335 = vmatpush.bf16.msra.mxu2 %v517_v20 }
  0x28   :  { %171 = vmatpush.bf16.msra.mxu0 %v499_v10 }
  0x29   :  { %254 = vmatpush.bf16.msra.mxu1 %v507_v14 }
  0x2a   :  { %336 = vmatpush.bf16.msra.mxu2 %v516_v21 }
  0x2c   :  { %172 = vmatpush.bf16.msra.mxu0 %v498_v11 }
  0x2d   :  { %255 = vmatpush.bf16.msra.mxu1 %v506_v15 }
  0x2e   :  { %337 = vmatpush.bf16.msra.mxu2 %v515_v28 }
  0x30   :  { %173 = vmatpush.bf16.msra.mxu0 %v497_v12 }
  0x31   :  { %256 = vmatpush.bf16.msra.mxu1 %v505_v16 }
  0x32   :  { %338 = vmatpush.bf16.msra.mxu2 %v514_v29 }
  0x33   :  { %174 = vmatmul.bf16.vlgmr.msra.gmra.mxu0 %v496_v13 }
  0x36   :  { %339 = vmatpush.bf16.msra.mxu2 %v513_v30 }
  0xb0   :  { %v175_v22 = vpop.f32.mrf.mxu0 }
  0xb1   :  { %v176_v25 = vadd.f32 %v530_v23, %v175_v22 }
  0xb8   :  { %v177_v24 = vpop.f32.mrf.mxu0 }
  0xb9   :  { %v178_v26 = vadd.f32 %v530_v23, %v177_v24 }
  0xbb   :  { %v180_v27 = vpack.c.bf16 %v178_v26, %v176_v25 }
  0xbd   :  { %257 = vmatmul.bf16.vlgmr.msra.gmra.mxu1 %v180_v27 }
 0x13a   :  { %v258_v31 = vpop.f32.mrf.mxu1 }
 0x13b   :  { %v259_v34 = vadd.f32 %v531_v32, %v258_v31 }
 0x142   :  { %v260_v33 = vpop.f32.mrf.mxu1 }
 0x143   :  { %v261_v35 = vadd.f32 %v531_v32, %v260_v33 }
 0x145   :  { %v263_v36 = vpack.c.bf16 %v261_v35, %v259_v34 }
 0x147   :  { %340 = vmatmul.bf16.vlgmr.msra.gmra.mxu2 %v263_v36 }
 0x1ca   :  { %v341_v40 = vpop.f32.mrf.mxu2 }
 0x1cb   :  { %v342_v41 = vadd.f32 %v532_v39, %v341_v40 }
 0x1cd   :  { %v349_v42 = vsel %vm348_vm0, %v342_v41, -inf }
 0x1ce   :  { %351 = vmax.xlane.f32.xlu0 %v349_v42 }
 0x1d2   :  { %v343_v43 = vpop.f32.mrf.mxu2 }
 0x1d3   :  { %v344_v44 = vadd.f32 %v532_v39, %v343_v43 }
 0x1d5   :  { %v350_v45 = vsel %vm348_vm0, %v344_v44, -inf }
 0x1d6   :  { %353 = vmax.xlane.f32.xlu0 %v350_v45 }
 0x241   :  { %v352_v46 = vpop.xlane.xlu0 %351 }
 0x242   :  { %v355_v47 = vsub.f32 %v349_v42, %v352_v46 }
 0x244   :  { %v357_v48 = vmul.f32 1.442695, %v355_v47 }
 0x246   :  { %533 = vpow2.f32 %v357_v48 }
 0x249   :  { %v354_v49 = vpop.xlane.xlu0 %353 }
 0x24a   :  { %v356_v50 = vsub.f32 %v350_v45, %v354_v49 }
 0x24c   :  { %v534_v51 = vpop.eup %533  ;;  %v359_v52 = vmul.f32 1.442695, %v356_v50 }
 0x24d   :  { %361 = vadd.xlane.f32.xlu1 %v534_v51 }
 0x24e   :  { %535 = vpow2.f32 %v359_v52 }
 0x254   :  { %v536_v53 = vpop.eup %535 }
 0x255   :  { %363 = vadd.xlane.f32.xlu1 %v536_v53 }
 0x2c0   :  { %v362_v54 = vpop.xlane.xlu1 %361 }
 0x2c1   :  { %537 = vlog2.f32 %v362_v54 }
 0x2c7   :  { %v538_v55 = vpop.eup %537 }
 0x2c8   :  { %v366_v56 = vmul.f32 0.6931472, %v538_v55  ;;  %v364_v57 = vpop.xlane.xlu1 %363 }
 0x2c9   :  { %539 = vlog2.f32 %v364_v57 }
 0x2ca   :  { %v369_v58 = vadd.f32 %v366_v56, %v352_v46 }
 0x2cc   :  { %v371_v59 = vsub.f32 %v349_v42, %v369_v58 }
 0x2ce   :  { %373 = vst [vmem:[#allocation10] sm:$0xff] %v371_v59 }
 0x2cf   :  { %v540_v60 = vpop.eup %539 }
 0x2d0   :  { %v368_v61 = vmul.f32 0.6931472, %v540_v60 }
 0x2d2   :  { %v370_v62 = vadd.f32 %v368_v61, %v354_v49 }
 0x2d4   :  { %v372_v63 = vsub.f32 %v350_v45, %v370_v62 }
 0x2d6   :  { %374 = vst [vmem:[#allocation10 + $0x8] sm:$0xff] %v372_v63 }
 0x2d7   :  { %387 = dma.vmem_to_hbm [thread:$0]  %s380_s6, 256, %s382_s26, [#allocation4], %s676_s27, %s676_s27, %s677_s28  }
 0x2d8   :  { %667 = dma.done.wait [#allocation4], 256  }
 0x2d9   :  { %668 = vsyncadd [#allocation4], 4294967040 }
 0x2da   :  { %392 = vsyncpa [#allocation3], 1 }
 0x2db   :  { %393 = vsyncpa [#allocation6], 1 }
 0x2dc   :  { %394 = vsyncpa [#allocation9], 1 }
 0x2dd   :  { %395 = vsyncpa [#allocation4], 1 }

</bundles_post_ra>
